<compile_context>
chip_gen: v7x
topology: tpu7x:2x2x1
jax: 0.10.0
libtpu: 0.0.40
codegen_flags: <defaults>
</compile_context>

<pallas_src>
from functools import partial

import jax
import jax.numpy as jnp
from jax.experimental import pallas as pl
from jax.experimental.pallas import tpu as pltpu


# ---------------------------------------------------------------------------
# small-N path: one full-array VMEM block
# ---------------------------------------------------------------------------
def _adjacency_single_kernel(w_ref, m_ref, out_ref):
    w = w_ref[...]
    m = m_ref[...]
    n = w.shape[0]

    a = jax.nn.sigmoid(w) * m
    a = 0.5 * (a + a.T)

    # Fused zero-diagonal + add-identity: one select on the diag predicate,
    # no f32 `eye` temporary is materialized.
    row = jax.lax.broadcasted_iota(jnp.int32, (n, n), 0)
    col = jax.lax.broadcasted_iota(jnp.int32, (n, n), 1)
    a_hat = jnp.where(row == col, 1.0, a)

    d = jnp.sum(a_hat, axis=1, keepdims=True)                 # (N, 1)
    # d > 0 guard (torch's inf -> 0 on D^-0.5); rsqrt rides the EUP slot.
    d_inv_sqrt = jnp.where(d > 0.0, jax.lax.rsqrt(d), 0.0)

    out_ref[...] = d_inv_sqrt * a_hat * d_inv_sqrt.T


def _forward_single_block(edge_weights, structure_mask):
    N = edge_weights.shape[0]
    return pl.pallas_call(
        _adjacency_single_kernel,
        out_shape=jax.ShapeDtypeStruct((N, N), jnp.float32),
        in_specs=[
            pl.BlockSpec((N, N), lambda: (0, 0)),
            pl.BlockSpec((N, N), lambda: (0, 0)),
        ],
        out_specs=pl.BlockSpec((N, N), lambda: (0, 0)),
    )(edge_weights, structure_mask)


# ---------------------------------------------------------------------------
# tiled path, pass 1: upper-triangular tile pairs -> A_hat tiles + degree
# ---------------------------------------------------------------------------
def _pair_tables(nt):
    """Linearized grid order: for each i<=j, a 'primary' step (out block (i,j),
    compute + cache) immediately followed, when i<j, by a 'secondary' step
    (out block (j,i), transpose of the cache; same source block indices so the
    pipeline issues no new input DMA)."""
    src_i, src_j, out_i, out_j = [], [], [], []
    for i in range(nt):
        for j in range(i, nt):
            src_i.append(i); src_j.append(j); out_i.append(i); out_j.append(j)
            if j > i:
                src_i.append(i); src_j.append(j); out_i.append(j); out_j.append(i)
    assert len(src_i) == nt * nt
    as_i32 = lambda x: jnp.asarray(x, dtype=jnp.int32)
    return as_i32(src_i), as_i32(src_j), as_i32(out_i), as_i32(out_j)


def _ahat_degree_kernel(src_i_ref, src_j_ref, out_i_ref, out_j_ref,
                        w_ij_ref, m_ij_ref, w_ji_ref, m_ji_ref,
                        ahat_ref, d_ref, cache_ref):
    s = pl.program_id(0)
    t = ahat_ref.shape[0]

    si = src_i_ref[s]
    sj = src_j_ref[s]
    oi = out_i_ref[s]
    oj = out_j_ref[s]
    primary = jnp.logical_and(oi == si, oj == sj)

    # Zero the grid-resident degree accumulator once.  This accumulation is
    # only valid because the d out_spec index is constant over the single
    # ("arbitrary") grid axis, so the block stays in VMEM for the whole grid
    # and is flushed to HBM only at the end.  Do not reorder / parallelize
    # this axis.
    @pl.when(s == 0)
    def _():
        d_ref[...] = jnp.zeros_like(d_ref)

    def _emit(tile):
        ahat_ref[...] = tile
        # Row-block `oi` of the global A_hat receives this tile's row sums.
        roff = pl.multiple_of(oi * t, t)
        d_ref[pl.ds(roff, t), :] += jnp.sum(tile, axis=1, keepdims=True)

    @pl.when(primary)
    def _():
        a_ij = jax.nn.sigmoid(w_ij_ref[...]) * m_ij_ref[...]
        a_ji = jax.nn.sigmoid(w_ji_ref[...]) * m_ji_ref[...]
        # (j,i) HBM block transposed locally == (i,j) block of global A.T.
        a_sym = 0.5 * (a_ij + a_ji.T)

        # Diagonal tiles only: fused zero-diag + self-loop select (local
        # row == col is the global diagonal here since si == sj).
        @pl.when(si == sj)
        def _():
            row = jax.lax.broadcasted_iota(jnp.int32, (t, t), 0)
            col = jax.lax.broadcasted_iota(jnp.int32, (t, t), 1)
            _emit(jnp.where(row == col, 1.0, a_sym))

        # Off-diagonal primary: no iota/select work, cache for the transpose
        # step that follows.
        @pl.when(si != sj)
        def _():
            cache_ref[...] = a_sym
            _emit(a_sym)

    @pl.when(jnp.logical_not(primary))
    def _():
        # Transpose-only step: inputs were not re-fetched (same block indices
        # as the previous step), so this step costs ~one output DMA.
        _emit(cache_ref[...].T)


# ---------------------------------------------------------------------------
# tiled path, pass 2: norm_A[i, j] = d^-1/2[i] * A_hat[i, j] * d^-1/2[j]
# ---------------------------------------------------------------------------
def _scale_kernel(ahat_ref, d_row_ref, d_col_ref, out_ref):
    # d -> d^-1/2 folded in here; rsqrt + select on T-element vectors is free
    # under a DMA-bound tile.  d >= 1 always (diag of A_hat is 1); the guard
    # mirrors torch's inf -> 0 rule.
    dr = d_row_ref[...]                                       # (T, 1)
    dc = d_col_ref[...]                                       # (1, T)
    r = jnp.where(dr > 0.0, jax.lax.rsqrt(dr), 0.0)
    c = jnp.where(dc > 0.0, jax.lax.rsqrt(dc), 0.0)
    out_ref[...] = r * ahat_ref[...] * c


def _forward_tiled(edge_weights, structure_mask, tile):
    N = edge_weights.shape[0]
    nt = N // tile
    src_i, src_j, out_i, out_j = _pair_tables(nt)

    # pass 1: single linearized grid axis; must stay "arbitrary" (persistent
    # cache scratch + resident degree accumulator carry across steps).
    a_hat, d = pl.pallas_call(
        _ahat_degree_kernel,
        out_shape=(
            jax.ShapeDtypeStruct((N, N), jnp.float32),
            jax.ShapeDtypeStruct((N, 1), jnp.float32),
        ),
        grid_spec=pltpu.PrefetchScalarGridSpec(
            num_scalar_prefetch=4,
            grid=(nt * nt,),
            in_specs=[
                pl.BlockSpec((tile, tile), lambda s, si, sj, oi, oj: (si[s], sj[s])),
                pl.BlockSpec((tile, tile), lambda s, si, sj, oi, oj: (si[s], sj[s])),
                pl.BlockSpec((tile, tile), lambda s, si, sj, oi, oj: (sj[s], si[s])),
                pl.BlockSpec((tile, tile), lambda s, si, sj, oi, oj: (sj[s], si[s])),
            ],
            out_specs=(
                pl.BlockSpec((tile, tile), lambda s, si, sj, oi, oj: (oi[s], oj[s])),
                pl.BlockSpec((N, 1), lambda s, si, sj, oi, oj: (0, 0)),
            ),
            scratch_shapes=[pltpu.VMEM((tile, tile), jnp.float32)],
        ),
        compiler_params=pltpu.CompilerParams(
            dimension_semantics=("arbitrary",)),
    )(src_i, src_j, out_i, out_j,
      edge_weights, structure_mask, edge_weights, structure_mask)

    d_t = jnp.reshape(d, (1, N))   # tiny (N,) relayout, left to XLA on purpose

    # pass 2: fully parallel elementwise scale (lane-dense (T,T) output tiles);
    # A_hat is dead after this, so alias it to the output buffer.
    # NOTE: if norm_A is immediately consumed by an MXU matmul (e.g. GCN
    # aggregation norm_A @ X), fuse this scaling into that matmul kernel and
    # never materialize norm_A — that removes another full N^2 HBM round trip.
    return pl.pallas_call(
        _scale_kernel,
        out_shape=jax.ShapeDtypeStruct((N, N), jnp.float32),
        grid=(nt, nt),
        in_specs=[
            pl.BlockSpec((tile, tile), lambda i, j: (i, j)),
            pl.BlockSpec((tile, 1), lambda i, j: (i, 0)),
            pl.BlockSpec((1, tile), lambda i, j: (0, j)),
        ],
        out_specs=pl.BlockSpec((tile, tile), lambda i, j: (i, j)),
        input_output_aliases={0: 0},
        compiler_params=pltpu.CompilerParams(
            dimension_semantics=("parallel", "parallel")),
    )(a_hat, d, d_t)


# ---------------------------------------------------------------------------
# public wrapper
# ---------------------------------------------------------------------------
_SINGLE_BLOCK_MAX = 512
# Never try 1024: ~40 MiB pass-1 working set overruns v7x VMEM headroom for
# ~1% roofline gain; 512 is the sweet spot on all of v5e/v6e/v7x.
_TILE_CANDIDATES = (512, 256, 128)


def _pick_tile(N):
    for t in _TILE_CANDIDATES:
        if N % t == 0:
            return t
    return None


@partial(jax.jit, static_argnames=("tile",))
def learnable_adjacency_forward(edge_weights, structure_mask, *, tile=None):
    edge_weights = edge_weights.astype(jnp.float32)
    structure_mask = structure_mask.astype(jnp.float32)
    N = edge_weights.shape[0]

    if tile is None and N <= _SINGLE_BLOCK_MAX:
        return _forward_single_block(edge_weights, structure_mask)

    t = tile if (tile is not None and N % tile == 0) else _pick_tile(N)
    if t is not None:
        return _forward_tiled(edge_weights, structure_mask, t)
    if N <= _SINGLE_BLOCK_MAX:
        return _forward_single_block(edge_weights, structure_mask)

    # Large N not divisible by any supported tile: zero-pad to a tile multiple
    # and slice back.  Padded mask rows/cols are 0, so ghost nodes only get a
    # self-loop and never perturb the real [:N, :N] block.
    Np = ((N + 255) // 256) * 256
    t = 512 if Np % 512 == 0 else 256
    pad = Np - N
    w_p = jnp.pad(edge_weights, ((0, pad), (0, pad)))
    m_p = jnp.pad(structure_mask, ((0, pad), (0, pad)))
    return _forward_tiled(w_p, m_p, t)[:N, :N]


# ---------------------------------------------------------------------------
# helpers / reference / test
# ---------------------------------------------------------------------------
def build_mask(N, mode="fully"):
    A = jnp.zeros((N, N), dtype=jnp.float32)
    if mode == "fully":
        A = jnp.ones((N, N), dtype=jnp.float32) - jnp.eye(N, dtype=jnp.float32)
    elif mode == "ring":
        idx = jnp.arange(N)
        A = A.at[idx, (idx + 1) % N].set(1.0)
        A = A.at[idx, (idx - 1) % N].set(1.0)
    elif mode == "chain":
        idx = jnp.arange(N - 1)
        A = A.at[idx, idx + 1].set(1.0)
    elif mode == "star":
        idx = jnp.arange(1, N)
        A = A.at[0, idx].set(1.0)
        A = A.at[idx, 0].set(1.0)
    return A


def _reference(edge_weights, structure_mask):
    N = edge_weights.shape[0]
    a = jax.nn.sigmoid(edge_weights) * structure_mask
    a = 0.5 * (a + a.T)
    a = a * (1.0 - jnp.eye(N))
    a_hat = a + jnp.eye(N)
    d = jnp.sum(a_hat, axis=1)
    d_inv_sqrt = jnp.where(d > 0, jax.lax.rsqrt(d), 0.0)
    return d_inv_sqrt[:, None] * a_hat * d_inv_sqrt[None, :]


if __name__ == "__main__":
    key = jax.random.PRNGKey(0)
    k1, k2, k3 = jax.random.split(key, 3)

    # --- small N (module-typical agent count): single-block path ------------
    N_small = 16
    w_small = jax.random.uniform(k1, (N_small, N_small), dtype=jnp.float32)
    m_small = build_mask(N_small, mode="fully")
    out_small = learnable_adjacency_forward(w_small, m_small)
    jax.block_until_ready(out_small)
    assert out_small.shape == (N_small, N_small)
    assert jnp.allclose(out_small, _reference(w_small, m_small),
                        atol=1e-5, rtol=1e-5)

    # --- larger N: upper-triangular tiled path (nt=3: diag / primary /
    # --- secondary steps all exercised) --------------------------------------
    N_big = 768
    w_big = jax.random.uniform(k2, (N_big, N_big), dtype=jnp.float32)
    m_big = build_mask(N_big, mode="ring")
    out_big = learnable_adjacency_forward(w_big, m_big, tile=256)
    jax.block_until_ready(out_big)
    assert out_big.shape == (N_big, N_big)
    assert jnp.allclose(out_big, _reference(w_big, m_big),
                        atol=1e-5, rtol=1e-5)

    # --- irregular N > 512: pad-and-slice path --------------------------------
    N_odd = 600
    w_odd = jax.random.uniform(k3, (N_odd, N_odd), dtype=jnp.float32)
    m_odd = build_mask(N_odd, mode="fully")
    out_odd = learnable_adjacency_forward(w_odd, m_odd)
    jax.block_until_ready(out_odd)
    assert out_odd.shape == (N_odd, N_odd)
    assert jnp.allclose(out_odd, _reference(w_odd, m_odd),
                        atol=1e-5, rtol=1e-5)

    print("KERNEL_OK")
</pallas_src>

<mosaic_0001>
module attributes {stable_mosaic.version = 11 : i64} {
  func.func @_adjacency_single_kernel(%arg0: memref<16x16xf32, #tpu.memory_space<vmem>>, %arg1: memref<16x16xf32, #tpu.memory_space<vmem>>, %arg2: memref<16x16xf32, #tpu.memory_space<vmem>>) attributes {dimension_semantics = [], scalar_prefetch = 0 : i64, scratch_operands = 0 : i64, tpu.core_type = #tpu.core_type<tc>} {
    %c0 = arith.constant 0 : index
    %c0_0 = arith.constant 0 : index
    %0 = vector.load %arg0[%c0, %c0_0] : memref<16x16xf32, #tpu.memory_space<vmem>>, vector<16x16xf32>
    %c0_1 = arith.constant 0 : index
    %c0_2 = arith.constant 0 : index
    %1 = vector.load %arg1[%c0_1, %c0_2] : memref<16x16xf32, #tpu.memory_space<vmem>>, vector<16x16xf32>
    %2 = arith.negf %0 : vector<16x16xf32>
    %3 = math.exp %2 : vector<16x16xf32>
    %cst = arith.constant 1.000000e+00 : f32
    %4 = vector.broadcast %cst : f32 to vector<16x16xf32>
    %5 = arith.addf %4, %3 : vector<16x16xf32>
    %6 = arith.divf %4, %5 : vector<16x16xf32>
    %7 = arith.mulf %6, %1 : vector<16x16xf32>
    %8 = tpu.transpose %7, [1, 0] : vector<16x16xf32> -> vector<16x16xf32>
    %9 = arith.addf %7, %8 : vector<16x16xf32>
    %cst_3 = arith.constant 5.000000e-01 : f32
    %10 = vector.broadcast %cst_3 : f32 to vector<16x16xf32>
    %11 = arith.mulf %10, %9 : vector<16x16xf32>
    %12 = tpu.iota {dimensions = array<i32: 0>} : vector<16x16xi32>
    %13 = tpu.iota {dimensions = array<i32: 1>} : vector<16x16xi32>
    %14 = arith.cmpi eq, %12, %13 : vector<16x16xi32>
    %cst_4 = arith.constant 1.000000e+00 : f32
    %15 = vector.broadcast %cst_4 : f32 to vector<16x16xf32>
    %16 = arith.select %14, %15, %11 : vector<16x16xi1>, vector<16x16xf32>
    %cst_5 = arith.constant dense<0.000000e+00> : vector<16xf32>
    %17 = vector.multi_reduction <add>, %16, %cst_5 [1] : vector<16x16xf32> to vector<16xf32>
    %18 = vector.shape_cast %17 : vector<16xf32> to vector<16x1xf32>
    %cst_6 = arith.constant 0.000000e+00 : f32
    %19 = vector.broadcast %cst_6 : f32 to vector<16x1xf32>
    %20 = arith.cmpf ogt, %18, %19 : vector<16x1xf32>
    %21 = math.rsqrt %18 : vector<16x1xf32>
    %cst_7 = arith.constant 0.000000e+00 : f32
    %22 = vector.broadcast %cst_7 : f32 to vector<16x1xf32>
    %23 = arith.select %20, %21, %22 : vector<16x1xi1>, vector<16x1xf32>
    %24 = vector.broadcast %23 : vector<16x1xf32> to vector<16x16xf32>
    %25 = arith.mulf %24, %16 : vector<16x16xf32>
    %26 = tpu.transpose %23, [1, 0] : vector<16x1xf32> -> vector<1x16xf32>
    %27 = vector.broadcast %26 : vector<1x16xf32> to vector<16x16xf32>
    %28 = arith.mulf %25, %27 : vector<16x16xf32>
    %c0_8 = arith.constant 0 : index
    %c0_9 = arith.constant 0 : index
    %29 = vector.load %arg2[%c0_8, %c0_9] : memref<16x16xf32, #tpu.memory_space<vmem>>, vector<16x16xf32>
    tpu.vector_store %arg2[%c0_8, %c0_9], %28 {strides = array<i32>} : memref<16x16xf32, #tpu.memory_space<vmem>>, vector<16x16xf32>,
    return
  }
}

</mosaic_0001>

<bundles_post_ra>
// kernel: learnable_adjacency_forward.1
= control target key start
LH: loop header
LB: loop body
LE: loop exit
PB: predicated region body
PF: predicated region fallthrough
CT: control target
= control target key end

     0   :  { %7 = vsyncpa [#allocation3], 0  ;;  %s337_s0 = inlined_call_operand.hbm [shape: f32[16,16], index: 0, kind: input, shape index: {}]   ;;  %s338_s1 = inlined_call_operand.hbm [shape: f32[16,16], index: 1, kind: input, shape index: {}]   ;;  %s339_s2 = inlined_call_operand.hbm [shape: f32[16,16], index: 2, kind: output, shape index: {}]  }
   0x1   :  { %8 = vsyncpa [#allocation6], 0 }
   0x2   :  { %9 = vsyncpa [#allocation4], 0  ;;  %s268_s9 = smov [#allocation2]   ;;  %s196_s13 = scalar_lea.hbm %s337_s0, 256 }
   0x3   :  { %s15_s10 = sshll.u32 %s268_s9, 4  ;;  %p197_p0 = scmp.ne.s32.totalorder %s337_s0, %s196_s13  ;;  %s16_s10 = int_to_ptr.vmem [resolvable:$true] %s15_s10 }
   0x4   :  { %p200_p1 = scmp.lt.u32.totalorder %s196_s13, %s337_s0 }
   0x6   :  { %p202_p2 = pnand %p200_p1, %p197_p0 }
   0x8   :  { %205 = shalt.err (!%p202_p2)
}
   0x9   :  { %s206_s18 = scalar_lea.vmem %s16_s10, 256  ;;  %p211_p4 = scmp.lt.s32.totalorder %s16_s10, %s16_s10 }
   0xa   :  { %p207_p3 = scmp.ne.s32.totalorder %s16_s10, %s206_s18  ;;  %p212_p5 = scmp.lt.s32.totalorder %s206_s18, %s206_s18 }
   0xc   :  { %p213_p6 = por %p212_p5, %p211_p4 }
   0xe   :  { %p214_p7 = pnand %p213_p6, %p207_p3 }
  0x10   :  { %217 = shalt.err (!%p214_p7)
}
  0x11   :  { %s269_s19 = smov 128   ;;  %s270_s20 = smov 8  }
  0x12   :  { %21 = dma.hbm_to_vmem [thread:$0]  %s337_s0, 256, %s16_s10, [#allocation3], %s269_s19, %s269_s19, %s270_s20  }
  0x13   :  { %s271_s23 = smov [#allocation5]   ;;  %s218_s27 = scalar_lea.hbm %s338_s1, 256 }
  0x14   :  { %s27_s24 = sshll.u32 %s271_s23, 4  ;;  %p219_p8 = scmp.ne.s32.totalorder %s338_s1, %s218_s27  ;;  %s28_s24 = int_to_ptr.vmem [resolvable:$true] %s27_s24 }
  0x15   :  { %p222_p9 = scmp.lt.u32.totalorder %s218_s27, %s338_s1 }
  0x17   :  { %p224_p10 = pnand %p222_p9, %p219_p8 }
  0x19   :  { %227 = shalt.err (!%p224_p10)
}
  0x1a   :  { %s228_s4 = scalar_lea.vmem %s28_s24, 256  ;;  %p233_p12 = scmp.lt.s32.totalorder %s28_s24, %s28_s24 }
  0x1b   :  { %p229_p11 = scmp.ne.s32.totalorder %s28_s24, %s228_s4  ;;  %p234_p13 = scmp.lt.s32.totalorder %s228_s4, %s228_s4 }
  0x1d   :  { %p235_p0 = por %p234_p13, %p233_p12 }
  0x1f   :  { %p236_p1 = pnand %p235_p0, %p229_p11 }
  0x21   :  { %239 = shalt.err (!%p236_p1)
}
  0x22   :  { %33 = dma.hbm_to_vmem [thread:$0]  %s338_s1, 256, %s28_s24, [#allocation6], %s269_s19, %s269_s19, %s270_s20  }
  0x23   :  { %262 = dma.done.wait [#allocation3], 256  }
  0x24   :  { %263 = vsyncadd [#allocation3], 4294967040 }
  0x25   :  { %264 = dma.done.wait [#allocation6], 256  }
  0x26   :  { %265 = vsyncadd [#allocation6], 4294967040  ;;  %v40_v0 = vld [vmem:[#allocation2] sm:$0xff]  ;;  %v41_v1 = vld [vmem:[#allocation2 + $0x8] sm:$0xff]  ;;  %v94_v14 = vlaneseq  ;;  %vm103_vm1 = vcmask 130048   ;;  %s272_s1 = smov [#allocation7]  }
  0x27   :  { %v176_v2 = vmul.f32 -1.442695, %v40_v0  ;;  %v177_v3 = vmul.f32 -1.442695, %v41_v1  ;;  %v42_v8 = vld [vmem:[#allocation5] sm:$0xff]  ;;  %v43_v10 = vld [vmem:[#allocation5 + $0x8] sm:$0xff] }
  0x28   :  { %v95_v15 = vshrl.u32 %v94_v14, 7  ;;  %v98_v16 = vand.u32 127, %v94_v14  ;;  %s163_s6 = sshll.u32 %s272_s1, 4  ;;  %s164_s6 = int_to_ptr.vmem [resolvable:$true] %s163_s6 }
  0x29   :  { %184 = vpow2.f32 %v176_v2  ;;  %s240_s7 = scalar_lea.vmem %s164_s6, 256  ;;  %p245_p3 = scmp.lt.s32.totalorder %s164_s6, %s164_s6 }
  0x2a   :  { %186 = vpow2.f32 %v177_v3  ;;  %vm99_vm0 = vcmp.eq.s32.totalorder %v95_v15, %v98_v16  ;;  %v96_v19 = vadd.s32 8, %v95_v15  ;;  %v152_v34 = vsub.s32 0, %v95_v15  ;;  %p241_p2 = scmp.ne.s32.totalorder %s164_s6, %s240_s7  ;;  %p246_p4 = scmp.lt.s32.totalorder %s240_s7, %s240_s7 }
  0x2c   :  { %vm100_vm2 = vcmp.eq.s32.totalorder %v96_v19, %v98_v16  ;;  %p247_p5 = por %p246_p4, %p245_p3 }
  0x2e   :  { %p248_p6 = pnand %p247_p5, %p241_p2 }
  0x33   :  { %v185_v4 = vpop.eup %184 }
  0x34   :  { %v187_v5 = vpop.eup %186  ;;  %v50_v6 = vadd.f32 1.0, %v185_v4 }
  0x35   :  { %v51_v7 = vadd.f32 1.0, %v187_v5 }
  0x36   :  { %188 = vrcp.f32 %v50_v6 }
  0x37   :  { %190 = vrcp.f32 %v51_v7 }
  0x40   :  { %v189_v9 = vpop.eup %188 }
  0x41   :  { %v191_v11 = vpop.eup %190  ;;  %v56_v12 = vmul.f32 %v189_v9, %v42_v8 }
  0x42   :  { %v57_v13 = vmul.f32 %v191_v11, %v43_v10 }
  0x43   :  { %58 = vxpose.xlu0.b32.start [1/2] (short) (narrow) %v56_v12, 16 }
  0x47   :  { %59 = vxpose.xlu0.b32.end [2/2] (short) (narrow) %v57_v13, 16 }
  0xc3   :  { %v74_v17 = vpop.trf.xlu0 }
  0xc4   :  { %v90_v18 = vadd.f32 %v74_v17, %v56_v12 }
  0xc6   :  { %v92_v20 = vmul.f32 0.5, %v90_v18 }
  0xc7   :  { %v75_v21 = vpop.trf.xlu0 }
  0xc8   :  { %v91_v22 = vadd.f32 %v75_v21, %v57_v13  ;;  %v101_v23 = vsel %vm99_vm0, 1.0, %v92_v20 }
  0xc9   :  { %v104_v24 = vsel %vm103_vm1, %v101_v23, 0.0 }
  0xca   :  { %v93_v25 = vmul.f32 0.5, %v91_v22  ;;  %105 = vadd.xlane.f32.xlu1 %v104_v24 }
  0xcc   :  { %v102_v26 = vsel %vm100_vm2, 1.0, %v93_v25 }
  0xcd   :  { %v107_v27 = vsel %vm103_vm1, %v102_v26, 0.0 }
  0xce   :  { %108 = vadd.xlane.f32.xlu1 %v107_v27 }
 0x157   :  { %v106_v28 = vpop.xlane.xlu1 %105 }
 0x158   :  { %192 = vrsqrt.f32 %v106_v28  ;;  %vm110_vm3 = vcmp.gt.f32.partialorder %v106_v28, 0.0 }
 0x15b   :  { %v109_v29 = vpop.xlane.xlu1 %108 }
 0x15c   :  { %194 = vrsqrt.f32 %v109_v29  ;;  %vm111_vm4 = vcmp.gt.f32.partialorder %v109_v29, 0.0 }
 0x162   :  { %v193_v30 = vpop.eup %192 }
 0x163   :  { %v114_v31 = vsel %vm110_vm3, %v193_v30, 0.0 }
 0x164   :  { %118 = vxpose.xlu0.b32.start [1/2] (short) (narrow) %v114_v31, 8  ;;  %v116_v37 = vmul.f32 %v114_v31, %v101_v23 }
 0x166   :  { %v195_v32 = vpop.eup %194 }
 0x167   :  { %v115_v33 = vsel %vm111_vm4, %v195_v32, 0.0 }
 0x168   :  { %119 = vxpose.xlu0.b32.end [2/2] (short) (narrow) %v115_v33, 8  ;;  %v117_v36 = vmul.f32 %v115_v33, %v102_v26 }
 0x1e4   :  { %v134_v35 = vpop.trf.xlu0 }
 0x1e5   :  { %v153_v38 = vrot.slane %v134_v35, %v152_v34 }
 0x1e7   :  { %v154_v39 = vmul.f32 %v153_v38, %v116_v37  ;;  %v155_v40 = vmul.f32 %v153_v38, %v117_v36 }
 0x1e9   :  { %156 = vst.msk [vmem:[#allocation7] sm:$0xff] %vm103_vm1, %v154_v39  ;;  %157 = vst.msk [vmem:[#allocation7 + $0x8] sm:$0xff] %vm103_vm1, %v155_v40 }
 0x1ea   :  { %251 = shalt.err (!%p248_p6)
}
 0x1eb   :  { %s252_s10 = scalar_lea.hbm %s339_s2, 256 }
 0x1ec   :  { %p253_p7 = scmp.ne.s32.totalorder %s339_s2, %s252_s10  ;;  %p256_p8 = scmp.lt.u32.totalorder %s252_s10, %s339_s2 }
 0x1ee   :  { %p258_p9 = pnand %p256_p8, %p253_p7 }
 0x1f0   :  { %261 = shalt.err (!%p258_p9)
}
 0x1f1   :  { %169 = dma.vmem_to_hbm [thread:$0]  %s164_s6, 256, %s339_s2, [#allocation4], %s269_s19, %s269_s19, %s270_s20  }
 0x1f2   :  { %266 = dma.done.wait [#allocation4], 256  }
 0x1f3   :  { %267 = vsyncadd [#allocation4], 4294967040 }
 0x1f4   :  { %173 = vsyncpa [#allocation3], 1 }
 0x1f5   :  { %174 = vsyncpa [#allocation6], 1 }
 0x1f6   :  { %175 = vsyncpa [#allocation4], 1 }

</bundles_post_ra>
